<compile_context>
chip_gen: v7x
topology: tpu7x:2x2x1
jax: 0.10.0
libtpu: 0.0.40
codegen_flags: <defaults>
</compile_context>

<pallas_src>
import jax
import jax.numpy as jnp
from jax.experimental import pallas as pl
from jax.experimental.pallas import tpu as pltpu


_LANE = 128        # vreg lane width
_SUBLANE = 8       # f32 sublane count
_NEG_BIG = -1e30   # poison value for padded softmax lanes


def _round_up(n, m):
    return (n + m - 1) // m * m


def _vrnn_seq_kernel(xu_ref, h0_ref, w_ref, v_ref, vb_ref, out_ref, h_ref):
    """One grid step == one timestep of the recurrence.

    xu_ref : (1, B, H)    precomputed x_t @ U^T + b_w (streamed per step)
    h0_ref : (B, H)       initial hidden (consumed at t == 0)
    w_ref  : (H, H)       W^T           (VMEM-resident, constant index_map)
    v_ref  : (H, Opad)    V^T, zero-padded to lane width (VMEM-resident)
    vb_ref : (1, Opad)    v bias, padded lanes = -1e30   (VMEM-resident)
    out_ref: (1, B, Opad) per-step log-softmax output (lane-dense stores)
    h_ref  : (B, H)       hidden state; constant index_map => resident block
    """
    t = pl.program_id(0)

    @pl.when(t == 0)
    def _():
        h_ref[...] = h0_ref[...]

    # a = h @ W^T + (x @ U^T + b_w); only one MXU contraction on the serial path.
    a = jnp.dot(h_ref[...], w_ref[...],
                preferred_element_type=jnp.float32) + xu_ref[0]
    h_new = jnp.tanh(a)

    # Output head + numerically stable log-softmax (all f32, written straight
    # from the accumulator, no extra VMEM staging).  Padded lanes carry a -1e30
    # bias so exp() underflows to 0 and the reduction is unaffected.
    logits = jnp.dot(h_new, v_ref[...],
                     preferred_element_type=jnp.float32) + vb_ref[...]
    m = jnp.max(logits, axis=1, keepdims=True)
    shifted = logits - m
    lse = jnp.log(jnp.sum(jnp.exp(shifted), axis=1, keepdims=True))

    out_ref[0] = (shifted - lse).astype(out_ref.dtype)
    h_ref[...] = h_new.astype(h_ref.dtype)


def prepare_params(u_w, w_w, w_b, v_w, v_b):
    """One-time parameter preprocessing (hoisted out of the per-step path).

    PyTorch Linear stores (out, in); pre-transpose once to (in, out), pad the
    output head to the 128-lane vreg width, poison the padded bias lanes.
    """
    H = w_w.shape[0]
    O = v_w.shape[0]
    Opad = _round_up(O, _LANE)

    u_t = jnp.asarray(u_w, jnp.float32).T                      # (I, H)
    w_t = jnp.asarray(w_w, jnp.float32).T                      # (H, H)
    wb = jnp.asarray(w_b, jnp.float32).reshape(1, H)           # (1, H)
    v_t = jnp.zeros((H, Opad), jnp.float32).at[:, :O].set(
        jnp.asarray(v_w, jnp.float32).T)                       # (H, Opad)
    vb = jnp.full((1, Opad), _NEG_BIG, jnp.float32).at[0, :O].set(
        jnp.asarray(v_b, jnp.float32))                         # (1, Opad)

    return {"u_t": u_t, "w_t": w_t, "wb": wb, "v_t": v_t, "vb": vb, "O": O}


def vrnn_sequence(xs, h0, params):
    """Run the full recurrence for a sequence inside one pallas_call.

    xs : (T, B, I) inputs, h0 : (B, H) initial hidden.
    Returns (log-softmax outputs (T, B, O), final hidden (B, H)).
    """
    T, B, I = xs.shape
    H = params["w_t"].shape[0]
    Opad = params["v_t"].shape[1]
    O = params["O"]

    # Sublane-dense batch: pad B up to 8; padded rows are zeros, sliced off later.
    Bp = _round_up(B, _SUBLANE)
    xs_p = jnp.zeros((T, Bp, I), jnp.float32).at[:, :B, :].set(xs)
    h0_p = jnp.zeros((Bp, H), jnp.float32).at[:B, :].set(h0)

    # Hoist the input projection out of the serial loop: one big matmul over
    # all T steps with the w-bias folded in.
    xu_all = (xs_p.reshape(T * Bp, I) @ params["u_t"]
              + params["wb"]).reshape(T, Bp, H)

    out_p, h_final_p = pl.pallas_call(
        _vrnn_seq_kernel,
        grid=(T,),
        in_specs=[
            pl.BlockSpec((1, Bp, H), lambda t: (t, 0, 0)),     # xu_t  (streamed)
            pl.BlockSpec((Bp, H), lambda t: (0, 0)),           # h0
            pl.BlockSpec((H, H), lambda t: (0, 0)),            # W^T   (resident)
            pl.BlockSpec((H, Opad), lambda t: (0, 0)),         # V^T   (resident)
            pl.BlockSpec((1, Opad), lambda t: (0, 0)),         # v bias(resident)
        ],
        out_specs=(
            pl.BlockSpec((1, Bp, Opad), lambda t: (t, 0, 0)),  # per-step output
            pl.BlockSpec((Bp, H), lambda t: (0, 0)),           # hidden (resident)
        ),
        out_shape=(
            jax.ShapeDtypeStruct((T, Bp, Opad), jnp.float32),
            jax.ShapeDtypeStruct((Bp, H), jnp.float32),
        ),
        compiler_params=pltpu.CompilerParams(
            dimension_semantics=("arbitrary",),   # recurrence over T is sequential
            vmem_limit_bytes=32 * 1024 * 1024,
        ),
    )(xu_all, h0_p, params["w_t"], params["v_t"], params["vb"])

    return out_p[:, :B, :O], h_final_p[:B, :]


def vrnn_forward(x, h, params):
    """Single step — identical semantics to vRNN.forward(input, hidden)."""
    out, h_new = vrnn_sequence(x[None], h, params)
    return out[0], h_new


# -------------------------- pure-JAX references -----------------------------

def _reference_step(x, h, u_w, w_w, w_b, v_w, v_b):
    a = h @ w_w.T + w_b + x @ u_w.T
    h_new = jnp.tanh(a)
    out = jax.nn.log_softmax(h_new @ v_w.T + v_b, axis=1)
    return out, h_new


def _reference_sequence(xs, h0, u_w, w_w, w_b, v_w, v_b):
    def step(h, x):
        out, h_new = _reference_step(x, h, u_w, w_w, w_b, v_w, v_b)
        return h_new, out
    h_final, outs = jax.lax.scan(step, h0, xs)
    return outs, h_final


if __name__ == "__main__":
    # Small shapes consistent with the module (name generator sizes).
    T, B = 8, 2
    input_size, hidden_size, output_size = 16, 32, 16

    key = jax.random.PRNGKey(0)
    k = jax.random.split(key, 7)

    def uinit(kk, shape, fan_in):
        lim = 1.0 / jnp.sqrt(fan_in)
        return jax.random.uniform(kk, shape, jnp.float32, -lim, lim)

    xs = jax.random.normal(k[0], (T, B, input_size), dtype=jnp.float32)
    h0 = jnp.zeros((B, hidden_size), dtype=jnp.float32)     # initHidden (batched)

    u_w = uinit(k[1], (hidden_size, input_size), input_size)     # u: no bias
    w_w = uinit(k[2], (hidden_size, hidden_size), hidden_size)
    w_b = uinit(k[3], (hidden_size,), hidden_size)
    v_w = uinit(k[4], (output_size, hidden_size), hidden_size)
    v_b = uinit(k[5], (output_size,), hidden_size)

    params = prepare_params(u_w, w_w, w_b, v_w, v_b)   # one-time preprocessing

    # Full-sequence recurrence in a single pallas_call.
    outs, h_final = vrnn_sequence(xs, h0, params)
    jax.block_until_ready((outs, h_final))

    ref_outs, ref_h = _reference_sequence(xs, h0, u_w, w_w, w_b, v_w, v_b)
    assert outs.shape == (T, B, output_size)
    assert h_final.shape == (B, hidden_size)
    assert jnp.allclose(outs, ref_outs, atol=1e-5, rtol=1e-5), "sequence output mismatch"
    assert jnp.allclose(h_final, ref_h, atol=1e-5, rtol=1e-5), "sequence hidden mismatch"

    # Single-step path (exact module.forward semantics).
    out1, h1 = vrnn_forward(xs[0], h0, params)
    jax.block_until_ready((out1, h1))
    ref_out1, ref_h1 = _reference_step(xs[0], h0, u_w, w_w, w_b, v_w, v_b)
    assert jnp.allclose(out1, ref_out1, atol=1e-5, rtol=1e-5), "step output mismatch"
    assert jnp.allclose(h1, ref_h1, atol=1e-5, rtol=1e-5), "step hidden mismatch"

    print("KERNEL_OK")
</pallas_src>

<mosaic_0001>
module attributes {stable_mosaic.version = 11 : i64} {
  func.func @_vrnn_seq_kernel(%arg0: i32, %arg1: memref<1x8x32xf32, #tpu.memory_space<vmem>>, %arg2: memref<8x32xf32, #tpu.memory_space<vmem>>, %arg3: memref<32x32xf32, #tpu.memory_space<vmem>>, %arg4: memref<32x128xf32, #tpu.memory_space<vmem>>, %arg5: memref<1x128xf32, #tpu.memory_space<vmem>>, %arg6: memref<1x8x128xf32, #tpu.memory_space<vmem>>, %arg7: memref<8x32xf32, #tpu.memory_space<vmem>>) attributes {dimension_semantics = [#tpu.dimension_semantics<arbitrary>], iteration_bounds = array<i64: 8>, scalar_prefetch = 0 : i64, scratch_operands = 0 : i64, tpu.core_type = #tpu.core_type<tc>, window_params = [{transform_indices = @transform_0, window_bounds = array<i64: 1, 8, 32>}, {pipeline_mode = #tpu.pipeline_mode<synchronous>, transform_indices = @transform_1, window_bounds = array<i64: 8, 32>}, {pipeline_mode = #tpu.pipeline_mode<synchronous>, transform_indices = @transform_2, window_bounds = array<i64: 32, 32>}, {pipeline_mode = #tpu.pipeline_mode<synchronous>, transform_indices = @transform_3, window_bounds = array<i64: 32, 128>}, {pipeline_mode = #tpu.pipeline_mode<synchronous>, transform_indices = @transform_4, window_bounds = array<i64: 1, 128>}, {transform_indices = @transform_5, window_bounds = array<i64: 1, 8, 128>}, {pipeline_mode = #tpu.pipeline_mode<synchronous>, transform_indices = @transform_6, window_bounds = array<i64: 8, 32>}]} {
    %c0_i32 = arith.constant 0 : i32
    %0 = arith.cmpi eq, %arg0, %c0_i32 : i32
    %1 = arith.extui %0 : i1 to i32
    %c0_i32_0 = arith.constant 0 : i32
    %2 = arith.cmpi ne, %1, %c0_i32_0 : i32
    scf.if %2 {
      %c0_19 = arith.constant 0 : index
      %c0_20 = arith.constant 0 : index
      %29 = vector.load %arg2[%c0_19, %c0_20] : memref<8x32xf32, #tpu.memory_space<vmem>>, vector<8x32xf32>
      %c0_21 = arith.constant 0 : index
      %c0_22 = arith.constant 0 : index
      %30 = vector.load %arg7[%c0_21, %c0_22] : memref<8x32xf32, #tpu.memory_space<vmem>>, vector<8x32xf32>
      tpu.vector_store %arg7[%c0_21, %c0_22], %29 {strides = array<i32>} : memref<8x32xf32, #tpu.memory_space<vmem>>, vector<8x32xf32>,
    } else {
    }
    %c0 = arith.constant 0 : index
    %c0_1 = arith.constant 0 : index
    %3 = vector.load %arg7[%c0, %c0_1] : memref<8x32xf32, #tpu.memory_space<vmem>>, vector<8x32xf32>
    %c0_2 = arith.constant 0 : index
    %c0_3 = arith.constant 0 : index
    %4 = vector.load %arg3[%c0_2, %c0_3] : memref<32x32xf32, #tpu.memory_space<vmem>>, vector<32x32xf32>
    %cst = arith.constant dense<0.000000e+00> : vector<8x32xf32>
    %5 = tpu.matmul %3, %4, %cst {dimension_numbers = #tpu.dot_dimension_numbers<[1], [0], [0], [1], [0, 0, 1, 1], [], []>} : vector<8x32xf32>, vector<32x32xf32>, vector<8x32xf32> -> vector<8x32xf32>
    %c0_4 = arith.constant 0 : index
    %c0_5 = arith.constant 0 : index
    %c0_6 = arith.constant 0 : index
    %6 = vector.load %arg1[%c0_4, %c0_5, %c0_6] : memref<1x8x32xf32, #tpu.memory_space<vmem>>, vector<1x8x32xf32>
    %7 = vector.shape_cast %6 : vector<1x8x32xf32> to vector<8x32xf32>
    %8 = arith.addf %5, %7 : vector<8x32xf32>
    %9 = math.tanh %8 : vector<8x32xf32>
    %c0_7 = arith.constant 0 : index
    %c0_8 = arith.constant 0 : index
    %10 = vector.load %arg4[%c0_7, %c0_8] : memref<32x128xf32, #tpu.memory_space<vmem>>, vector<32x128xf32>
    %cst_9 = arith.constant dense<0.000000e+00> : vector<8x128xf32>
    %11 = tpu.matmul %9, %10, %cst_9 {dimension_numbers = #tpu.dot_dimension_numbers<[1], [0], [0], [1], [0, 0, 1, 1], [], []>} : vector<8x32xf32>, vector<32x128xf32>, vector<8x128xf32> -> vector<8x128xf32>
    %c0_10 = arith.constant 0 : index
    %c0_11 = arith.constant 0 : index
    %12 = vector.load %arg5[%c0_10, %c0_11] : memref<1x128xf32, #tpu.memory_space<vmem>>, vector<1x128xf32>
    %13 = vector.broadcast %12 : vector<1x128xf32> to vector<8x128xf32>
    %14 = arith.addf %11, %13 : vector<8x128xf32>
    %cst_12 = arith.constant dense<0xFF800000> : vector<8xf32>
    %15 = vector.multi_reduction <maximumf>, %14, %cst_12 [1] : vector<8x128xf32> to vector<8xf32>
    %16 = vector.shape_cast %15 : vector<8xf32> to vector<8x1xf32>
    %17 = vector.broadcast %16 : vector<8x1xf32> to vector<8x128xf32>
    %18 = arith.subf %14, %17 : vector<8x128xf32>
    %19 = math.exp %18 : vector<8x128xf32>
    %cst_13 = arith.constant dense<0.000000e+00> : vector<8xf32>
    %20 = vector.multi_reduction <add>, %19, %cst_13 [1] : vector<8x128xf32> to vector<8xf32>
    %21 = vector.shape_cast %20 : vector<8xf32> to vector<8x1xf32>
    %22 = math.log %21 : vector<8x1xf32>
    %23 = vector.broadcast %22 : vector<8x1xf32> to vector<8x128xf32>
    %24 = arith.subf %18, %23 : vector<8x128xf32>
    %c0_14 = arith.constant 0 : index
    %c0_15 = arith.constant 0 : index
    %c0_16 = arith.constant 0 : index
    %25 = vector.load %arg6[%c0_14, %c0_15, %c0_16] : memref<1x8x128xf32, #tpu.memory_space<vmem>>, vector<1x8x128xf32>
    %26 = vector.shape_cast %25 : vector<1x8x128xf32> to vector<8x128xf32>
    %27 = vector.shape_cast %24 : vector<8x128xf32> to vector<1x8x128xf32>
    tpu.vector_store %arg6[%c0_14, %c0_15, %c0_16], %27 {strides = array<i32>} : memref<1x8x128xf32, #tpu.memory_space<vmem>>, vector<1x8x128xf32>,
    %c0_17 = arith.constant 0 : index
    %c0_18 = arith.constant 0 : index
    %28 = vector.load %arg7[%c0_17, %c0_18] : memref<8x32xf32, #tpu.memory_space<vmem>>, vector<8x32xf32>
    tpu.vector_store %arg7[%c0_17, %c0_18], %9 {strides = array<i32>} : memref<8x32xf32, #tpu.memory_space<vmem>>, vector<8x32xf32>,
    return
  }
  func.func @transform_0(%arg0: i32) -> (i32, i32, i32) {
    %c0_i32 = arith.constant 0 : i32
    %c0_i32_0 = arith.constant 0 : i32
    %c0_i32_1 = arith.constant 0 : i32
    return %arg0, %c0_i32, %c0_i32_0 : i32, i32, i32
  }
  func.func @transform_1(%arg0: i32) -> (i32, i32) {
    %c0_i32 = arith.constant 0 : i32
    %c0_i32_0 = arith.constant 0 : i32
    %c0_i32_1 = arith.constant 0 : i32
    return %c0_i32, %c0_i32_0 : i32, i32
  }
  func.func @transform_2(%arg0: i32) -> (i32, i32) {
    %c0_i32 = arith.constant 0 : i32
    %c0_i32_0 = arith.constant 0 : i32
    %c0_i32_1 = arith.constant 0 : i32
    return %c0_i32, %c0_i32_0 : i32, i32
  }
  func.func @transform_3(%arg0: i32) -> (i32, i32) {
    %c0_i32 = arith.constant 0 : i32
    %c0_i32_0 = arith.constant 0 : i32
    %c0_i32_1 = arith.constant 0 : i32
    return %c0_i32, %c0_i32_0 : i32, i32
  }
  func.func @transform_4(%arg0: i32) -> (i32, i32) {
    %c0_i32 = arith.constant 0 : i32
    %c0_i32_0 = arith.constant 0 : i32
    %c0_i32_1 = arith.constant 0 : i32
    return %c0_i32, %c0_i32_0 : i32, i32
  }
  func.func @transform_5(%arg0: i32) -> (i32, i32, i32) {
    %c0_i32 = arith.constant 0 : i32
    %c0_i32_0 = arith.constant 0 : i32
    %c0_i32_1 = arith.constant 0 : i32
    return %arg0, %c0_i32, %c0_i32_0 : i32, i32, i32
  }
  func.func @transform_6(%arg0: i32) -> (i32, i32) {
    %c0_i32 = arith.constant 0 : i32
    %c0_i32_0 = arith.constant 0 : i32
    %c0_i32_1 = arith.constant 0 : i32
    return %c0_i32, %c0_i32_0 : i32, i32
  }
}

</mosaic_0001>

<bundles_post_ra>
// kernel: tpu_custom_call.1
= control target key start
LH: loop header
LB: loop body
LE: loop exit
PB: predicated region body
PF: predicated region fallthrough
CT: control target
= control target key end

     0   :  { %12 = vsyncpa [#allocation3], 0  ;;  %s1339_s0 = inlined_call_operand.hbm [shape: f32[8,8,32], index: 0, kind: input, shape index: {}]   ;;  %s1340_s1 = inlined_call_operand.hbm [shape: f32[8,32], index: 1, kind: input, shape index: {}]   ;;  %s1341_s2 = inlined_call_operand.hbm [shape: f32[32,32], index: 2, kind: input, shape index: {}]   ;;  %s1342_s3 = inlined_call_operand.hbm [shape: f32[32,128], index: 3, kind: input, shape index: {}]   ;;  %s1343_s4 = inlined_call_operand.vmem [shape: f32[1,128], index: 4, kind: input, shape index: {}]   ;;  %s1344_s5 = inlined_call_operand.hbm [shape: f32[8,8,128], index: 5, kind: output, shape index: {0}]   ;;  %s1345_s6 = inlined_call_operand.hbm [shape: f32[8,32], index: 6, kind: output, shape index: {1}]  }
   0x1   :  { %14 = vsyncpa [#allocation3 + $0x1], 0 }
   0x2   :  { %15 = vsyncpa [#allocation6], 0 }
   0x3   :  { %16 = vsyncpa [#allocation9], 0 }
   0x4   :  { %17 = vsyncpa [#allocation4], 0 }
   0x5   :  { %19 = vsyncpa [#allocation4 + $0x1], 0 }
   0x6   :  { %20 = vsyncpa [#allocation12], 0  ;;  %s1056_s21 = smov 0   ;;  %s1058_s22 = smov 0  }
   0x7   :  { %s1060_s23 = smov 0   ;;  %s1062_s24 = smov 0  }
   0x8 LB: > { %s1077_s25 = sadd.s32 4294967295, %s1008_s24   ;;  %s627_s26 = sadd.s32 4294967294, %s1008_s24   ;;  %s1008_s24 = sphi %s1062_s24, %s1373_s24   ;;  %s1004_s23 = sphi %s1060_s23, %s1372_s23   ;;  %s1000_s22 = sphi %s1058_s22, %s1371_s22   ;;  %s996_s21 = sphi %s1056_s21, %s1370_s21  }
   0x9   : > { %p46_p0 = scmp.ne.s32.totalorder %s1000_s22, %s996_s21  ;;  %p1346_p1 = scmp.eq.s32.totalorder %s1077_s25, 0 }
   0xa   : > { %p160_p3 = scmp.eq.s32.totalorder %s627_s26, 7  ;;  %p628_p5 = scmp.ge.s32.totalorder %s1008_s24, 1 }
   0xb   : > { %p1086_p4 = por %p1346_p1, %p46_p0  ;;  %p188_p7 = scmp.lt.s32.totalorder %s1008_s24, 9 }
   0xc   : > { %p1091_p6 = por %p160_p3, %p46_p0  ;;  %s1010_s30 = smov [#allocation5]  }
   0xd   : > { %s1349_s27 = scalar_select %p1086_p4, 1, 0 }
   0xe   : > { %s1350_s28 = scalar_select %p1091_p6, 1, 0 }
   0xf   : > { %p1097_p9 = pnand %p628_p5, %p188_p7  ;;  %s201_s7 = sshll.u32 %s1010_s30, 4  ;;  %s202_s7 = int_to_ptr.vmem [resolvable:$true] %s201_s7 }
  0x10   : > { %s1011_s8 = smov [#allocation7]   ;;  %s1012_s11 = smov [#allocation8]  }
  0x11   : > { %s1351_s29 = scalar_select %p1097_p9, 1, 0 }
  0x12   : > { %p715_p10 = pneg %p1097_p9  ;;  %s211_s9 = sshll.u32 %s1011_s8, 4  ;;  %s1109_s9 = int_to_ptr.vmem [resolvable:$true] %s211_s9 }
  0x13   : > { %s1111_s12 = sshll.u32 %s1012_s11, 4  ;;  %s790_s15 = scalar_lea.hbm %s1340_s1, 128  ;;  %s225_s12 = int_to_ptr.vmem [resolvable:$true] %s1111_s12 }
  0x14   : > { %p1105_p11 = pnand %p715_p10, %p1346_p1  ;;  %p791_p12 = scmp.ne.s32.totalorder %s1340_s1, %s790_s15 }
  0x15   : > { %p797_p5 = scmp.lt.u32.totalorder %s790_s15, %s1340_s1 }
  0x16   : > { %p1121_p13 = pneg %p1105_p11 }
  0x18   : > { %p793_p0 = pnand %p1121_p13, %p791_p12 }
  0x1a   : > { %p794_p3 = pneg %p793_p0 }
  0x1c   : > { %p799_p7 = pnand %p797_p5, %p794_p3 }
  0x1e   : > { %802 = shalt.err (!%p799_p7)
}
  0x1f   : > { %s803_s26 = scalar_lea.vmem %s202_s7, 128  ;;  %p811_p2 = scmp.lt.s32.totalorder %s202_s7, %s202_s7 }
  0x20   : > { %p804_p10 = scmp.ne.s32.totalorder %s202_s7, %s803_s26  ;;  %p812_p6 = scmp.lt.s32.totalorder %s803_s26, %s803_s26 }
  0x22   : > { %p806_p8 = pnand %p804_p10, %p1121_p13  ;;  %p813_p4 = por %p812_p6, %p811_p2 }
  0x24   : > { %p807_p1 = pneg %p806_p8 }
  0x26   : > { %p814_p9 = pnand %p813_p4, %p807_p1 }
  0x28   : > { %817 = shalt.err (!%p814_p9)
}
  0x29   : > { %718 = dma.hbm_to_vmem [thread:$0]  (!%p1105_p11), %s1340_s1, 128, %s202_s7, [#allocation6]  }
  0x2a   : > { %s818_s14 = scalar_lea.hbm %s1341_s2, 512 }
  0x2b   : > { %p819_p8 = scmp.ne.s32.totalorder %s1341_s2, %s818_s14  ;;  %p825_p1 = scmp.lt.u32.totalorder %s818_s14, %s1341_s2 }
  0x2d   : > { %p821_p12 = pnand %p819_p8, %p1121_p13 }
  0x2f   : > { %p822_p2 = pneg %p821_p12 }
  0x31   : > { %p827_p4 = pnand %p825_p1, %p822_p2 }
  0x33   : > { %830 = shalt.err (!%p827_p4)
}
  0x34   : > { %s831_s7 = scalar_lea.vmem %s1109_s9, 512  ;;  %p839_p3 = scmp.lt.s32.totalorder %s1109_s9, %s1109_s9 }
  0x35   : > { %p832_p6 = scmp.ne.s32.totalorder %s1109_s9, %s831_s7  ;;  %p840_p5 = scmp.lt.s32.totalorder %s831_s7, %s831_s7 }
  0x37   : > { %p834_p9 = pnand %p832_p6, %p1121_p13  ;;  %p841_p7 = por %p840_p5, %p839_p3 }
  0x39   : > { %p835_p0 = pneg %p834_p9 }
  0x3b   : > { %p842_p10 = pnand %p841_p7, %p835_p0 }
  0x3d   : > { %845 = shalt.err (!%p842_p10)
}
  0x3e   : > { %s1013_s20 = smov 128   ;;  %s1014_s26 = smov 8  }
  0x3f   : > { %721 = dma.hbm_to_vmem [thread:$0]  (!%p1105_p11), %s1341_s2, 512, %s1109_s9, [#allocation6], %s1013_s20, %s1013_s20, %s1014_s26  }
  0x40   : > { %s846_s14 = scalar_lea.hbm %s1342_s3, 512 }
  0x41   : > { %p847_p8 = scmp.ne.s32.totalorder %s1342_s3, %s846_s14  ;;  %p853_p1 = scmp.lt.u32.totalorder %s846_s14, %s1342_s3 }
  0x43   : > { %p849_p12 = pnand %p847_p8, %p1121_p13 }
  0x45   : > { %p850_p2 = pneg %p849_p12 }
  0x47   : > { %p855_p4 = pnand %p853_p1, %p850_p2 }
  0x49   : > { %858 = shalt.err (!%p855_p4)
}
  0x4a   : > { %s859_s7 = scalar_lea.vmem %s225_s12, 512  ;;  %p867_p3 = scmp.lt.s32.totalorder %s225_s12, %s225_s12 }
  0x4b   : > { %p860_p6 = scmp.ne.s32.totalorder %s225_s12, %s859_s7  ;;  %p868_p5 = scmp.lt.s32.totalorder %s859_s7, %s859_s7 }
  0x4d   : > { %p862_p9 = pnand %p860_p6, %p1121_p13  ;;  %p869_p7 = por %p868_p5, %p867_p3 }
  0x4f   : > { %p863_p0 = pneg %p862_p9 }
  0x51   : > { %p870_p10 = pnand %p869_p7, %p863_p0 }
  0x53   : > { %873 = shalt.err (!%p870_p10)
}
  0x54   : > { %724 = dma.hbm_to_vmem [thread:$0]  (!%p1105_p11), %s1342_s3, 512, %s225_s12, [#allocation9], %s1013_s20, %s1013_s20, %s1014_s26  }
  0x55   : > { %s1180_s18 = sadd.s32 1, %s1008_s24   ;;  %s33_s10 = sadd.s32 1, %s1004_s23 }
  0x56   : > { %s30_s8 = ssub.s32 %s1008_s24, %s1180_s18  ;;  %p40_p8 = scmp.ne.s32.totalorder %s1004_s23, %s1000_s22 }
  0x57   : > { %p31_p13 = scmp.eq.s32.totalorder %s30_s8, 0  ;;  %p41_p12 = scmp.eq.s32.totalorder %s1008_s24, 0 }
  0x58   : > { %p736_p2 = scmp.lt.s32.totalorder %s1008_s24, 8  ;;  %p1354_p4 = scmp.eq.s32.totalorder %s1077_s25, 7 }
  0x59   : > { %s1190_s11 = scalar_select %p31_p13, %s1004_s23, %s33_s10  }
  0x5a   : > { %p42_p1 = por %p41_p12, %p40_p8  ;;  %p1194_p6 = por %p1354_p4, %p40_p8 }
  0x5b   : > { %s241_s14 = sand.u32 1, %s1004_s23   ;;  %s634_s15 = sshll.u32 %s1008_s24, 7 }
  0x5c   : > { %s633_s12 = sshll.u32 %s241_s14, 3  ;;  %s1203_s16 = scalar_lea.hbm %s1339_s0, %s634_s15 }
  0x5d   : > { %s245_s17 = scalar_lea.vmem [#allocation2], %s633_s12  ;;  %p1205_p11 = pnand %p736_p2, %p42_p1 }
  0x5e   : > { %s252_s19 = sshll.u32 %s245_s17, 4  ;;  %s242_s9 = scalar_lea.sflag [#allocation3], %s241_s14  ;;  %s1209_s19 = int_to_ptr.vmem [resolvable:$true] %s252_s19 }
  0x5f   : > { %s874_s30 = scalar_lea.hbm %s1203_s16, 128  ;;  %p876_p0 = pneg %p1205_p11 }
  0x60   : > { %p875_p9 = scmp.ne.s32.totalorder %s1203_s16, %s874_s30  ;;  %s879_s15 = scalar_lea.hbm %s1339_s0, 1024 }
  0x61   : > { %p880_p7 = scmp.lt.u32.totalorder %s1203_s16, %s1339_s0  ;;  %p881_p10 = scmp.lt.u32.totalorder %s879_s15, %s874_s30 }
  0x62   : > { %p877_p3 = pnand %p876_p0, %p875_p9  ;;  %p883_p8 = scmp.lt.u32.totalorder %s874_s30, %s1203_s16 }
  0x63   : > { %p882_p13 = por %p881_p10, %p880_p7 }
  0x64   : > { %p878_p5 = pneg %p877_p3 }
  0x65   : > { %p884_p12 = por %p883_p8, %p882_p13 }
  0x67   : > { %p885_p2 = pnand %p884_p12, %p878_p5 }
  0x69   : > { %888 = shalt.err (!%p885_p2)
}
  0x6a   : > { %s889_s14 = scalar_lea.vmem %s1209_s19, 128  ;;  %s1015_s26 = smov [#allocation2]  }
  0x6b   : > { %p890_p1 = scmp.ne.s32.totalorder %s1209_s19, %s889_s14  ;;  %s894_s17 = sshll.u32 %s1015_s26, 4  ;;  %s895_s17 = int_to_ptr.vmem [resolvable:$false] %s894_s17 }
  0x6c   : > { %s896_s8 = scalar_lea.vmem %s895_s17, 256  ;;  %p897_p3 = scmp.lt.s32.totalorder %s1209_s19, %s895_s17 }
  0x6d   : > { %p892_p4 = pnand %p890_p1, %p876_p0  ;;  %p898_p7 = scmp.lt.s32.totalorder %s896_s8, %s889_s14 }
  0x6f   : > { %p893_p9 = pneg %p892_p4  ;;  %p899_p10 = por %p898_p7, %p897_p3 }
  0x71   : > { %p900_p13 = pnand %p899_p10, %p893_p9 }
  0x73   : > { %903 = shalt.err (!%p900_p13)
}
  0x74   : > { %728 = dma.hbm_to_vmem [thread:$0]  (!%p1205_p11), %s1203_s16, 128, %s1209_s19, %s242_s9  }
  0x75   : > { %p1357_p5 = scmp.ne.s32.totalorder %s1351_s29, 0 }
  0x76   : > { %s1239_s30 = sand.u32 (!%p1357_p5), 1, %s1000_s22   ;;  %p1358_p0 = scmp.ne.s32.totalorder (!%p1357_p5), %s1349_s27, 0 }
  0x77   : > { %261 = sbr.rel (%p1357_p5) target bundleno = 925 (0x39d), region = 40  ;;  %s636_s10 = sshll.u32 (!%p1357_p5), %s1239_s30, 3 }
  0x78   : > { %s264_s15 = scalar_lea.sflag (!%p1357_p5), [#allocation3], %s1239_s30  ;;  %s1243_s12 = scalar_lea.vmem (!%p1357_p5), [#allocation2], %s636_s10 }
  0x7e   : > { %975 = dma.done.wait (%p1358_p0), %s264_s15, 128  }
  0x7f   : > { %977 = vsyncadd (%p1358_p0), %s264_s15, 4294967168  ;;  %p1359_p11 = scmp.eq.s32.totalorder %s1077_s25, 0 }
  0x81   : > { %979 = dma.done.wait (%p1359_p11), [#allocation6], 640   ;;  %p1360_p8 = pmov %p1359_p11 }
  0x83   : > { %981 = vsyncadd (%p1360_p8), [#allocation6], 4294966656  ;;  %p1361_p12 = pmov %p1360_p8 }
  0x84   : > { %p1362_p2 = pmov %p1360_p8 }
  0x85   : > { %983 = dma.done.wait (%p1361_p12), [#allocation9], 512  }
  0x86   : > { %985 = vsyncadd (%p1362_p2), [#allocation9], 4294966784  ;;  %s1257_s29 = scalar_lea.vmem [#allocation10], %s636_s10  ;;  %p1363_p1 = scmp.ne.s32.totalorder %s1077_s25, 0 }
  0x87   : > { %v312_v0 = vld [vmem:[#allocation5] sm:$0xff] (!%p1363_p1)  ;;  %vm313_vm0 = vcmask (!%p1363_p1), 261120  }
  0x88   : > { %311 = sbr.rel (%p1363_p1) target bundleno = 143 (0x8f), region = 60  ;;  %314 = vst.msk [vmem:[#allocation11] sm:$0xff] (!%p1363_p1), %vm313_vm0, %v312_v0 }
  0x8f PF: > { %v316_v1 = vld [vmem:[#allocation7] sm:$0xff]  ;;  %v317_v2 = vld [vmem:[#allocation7 + $0x8] sm:$0xff]  ;;  %v318_v3 = vld [vmem:[#allocation7 + $0x10] sm:$0xff]  ;;  %v1016_v4 = vmov 0.0|0.0   ;;  %vm1017_vm1 = vmmov 0   ;;  %v1018_v7 = vmov 0.0  }
  0x90   : > { %683 = vmatprep.subr.bf16.mxu0 %v1016_v4  ;;  %v684_v5 = vpack.c.bf16 %v317_v2, %v316_v1  ;;  %v319_v6 = vld [vmem:[#allocation7 + $0x18] sm:$0xff]  ;;  %669 = vmatprep.mubr.msk.f32.mxu0 %vm1017_vm1, %v1018_v7  ;;  %v315_v9 = vld [vmem:[#allocation11] sm:$0xff]  ;;  %vm321_vm2 = vcmask 261120   ;;  %v396_v10 = vld [vmem:[#allocation8] sm:$0xff]  ;;  %s1019_s19 = smov [#allocation11]   ;;  %p1364_p9 = scmp.eq.s32.totalorder %s1077_s25, 7 }
  0x91   : > { %689 = vmatprep.subr.bf16.mxu1 %v1016_v4  ;;  %680 = vmatprep.mubr.msk.f32.mxu1 %vm1017_vm1, %v1018_v7  ;;  %v687_v8 = vpack.c.bf16 %v319_v6, %v318_v3  ;;  %v397_v11 = vld [vmem:[#allocation8 + $0x8] sm:$0xff]  ;;  %v398_v13 = vld [vmem:[#allocation8 + $0x10] sm:$0xff]  ;;  %v399_v14 = vld [vmem:[#allocation8 + $0x18] sm:$0xff]  ;;  %s517_s7 = sshll.u32 %s1019_s19, 4  ;;  %s518_s7 = int_to_ptr.vmem [resolvable:$true] %s517_s7 }
  0x92   : > { %685 = vmatpush3.bf16.msra.mxu0 %v684_v5  ;;  %v690_v12 = vpack.c.bf16 %v397_v11, %v396_v10  ;;  %v693_v15 = vpack.c.bf16 %v399_v14, %v398_v13  ;;  %v320_v16 = vld [vmem:[%s1243_s12] sm:$0xff]  ;;  %s904_s9 = scalar_lea.vmem %s518_s7, 128  ;;  %p911_p10 = scmp.lt.s32.totalorder %s518_s7, %s518_s7 }
  0x93   : > { %686 = vmatprep.subr.bf16.mxu0 %v1016_v4  ;;  %v643_v21 = vld [vmem:[%s1343_s4] ss:$0 sm:$0xff]  ;;  %p905_p4 = scmp.ne.s32.totalorder %s518_s7, %s904_s9  ;;  %p912_p13 = scmp.lt.s32.totalorder %s904_s9, %s904_s9 }
  0x94   : > { %691 = vmatpush3.bf16.msra.mxu1 %v690_v12 }
  0x95   : > { %692 = vmatprep.subr.bf16.mxu1 %v1016_v4  ;;  %p906_p3 = pnand %p905_p4, %p1364_p9  ;;  %p913_p5 = por %p912_p13, %p911_p10 }
  0x96   : > { %688 = vmatpush3.bf16.msra.mxu0 %v687_v8 }
  0x97   : > { %p907_p7 = pneg %p906_p3 }
  0x98   : > { %694 = vmatpush3.bf16.msra.mxu1 %v693_v15 }
  0x99   : > { %670 = vmatmul.mubr.msk.f32.vlgmr.msra.gmra.mrb[0].mxu0 %vm321_vm2, %v315_v9  ;;  %p914_p0 = pnand %p913_p5, %p907_p7 }
 0x16c   : > { %v391_v17 = vpop.f32.mrb[0].mxu0 }
 0x16d   : > { %v392_v18 = vadd.f32 %v391_v17, %v320_v16  ;;  %v671_v19 = vpop.f32.mrb[1].mxu0 }
 0x16f   : > { %784 = vtanh.f32 %v392_v18 }
 0x179   : > { %v785_v20 = vpop.eup %784 }
 0x17a   : > { %491 = vst.msk [vmem:[#allocation11] sm:$0xff] %vm321_vm2, %v785_v20  ;;  %681 = vmatmul.mubr.msk.f32.vlgmr.msra.gmra.mrb[0].mxu1 %vm321_vm2, %v785_v20 }
 0x24d   : > { %v476_v22 = vpop.f32.mrb[0].mxu1 }
 0x24e   : > { %v477_v23 = vadd.f32 %v643_v21, %v476_v22  ;;  %v682_v24 = vpop.f32.mrb[1].mxu1 }
 0x250   : > { %480 = vmax.xlane.f32.xlu0 %v477_v23 }
 0x2dd   : > { %v481_v25 = vpop.xlane.xlu0 %480 }
 0x2de   : > { %v482_v26 = vsub.f32 %v477_v23, %v481_v25 }
 0x2e0   : > { %v483_v27 = vmul.f32 1.442695, %v482_v26 }
 0x2e2   : > { %786 = vpow2.f32 %v483_v27 }
 0x2ec   : > { %v787_v28 = vpop.eup %786 }
 0x2ed   : > { %485 = vadd.xlane.f32.xlu0 %v787_v28 }
 0x2ee   : > { %917 = shalt.err (!%p914_p0)
}
 0x2ef   : > { %s918_s26 = scalar_lea.hbm %s1345_s6, 128  ;;  %p1365_p8 = pmov %p1364_p9 }
 0x2f0   : > { %p919_p11 = scmp.ne.s32.totalorder %s1345_s6, %s918_s26  ;;  %p924_p1 = scmp.lt.u32.totalorder %s918_s26, %s1345_s6 }
 0x2f2   : > { %p920_p12 = pnand %p919_p11, %p1365_p8 }
 0x2f4   : > { %p921_p2 = pneg %p920_p12 }
 0x2f6   : > { %p926_p4 = pnand %p924_p1, %p921_p2 }
 0x2f8   : > { %929 = shalt.err (!%p926_p4)
}
 0x2f9   : > { %p1366_p9 = pmov %p1365_p8  ;;  %s646_s16 = sshll.u32 %s1077_s25, 7 }
 0x2fa   : > { %s506_s19 = sshll.u32 %s1257_s29, 4  ;;  %s1291_s14 = scalar_lea.hbm %s1344_s5, %s646_s16  ;;  %s1293_s19 = int_to_ptr.vmem [resolvable:$true] %s506_s19 }
 0x2fb   : > { %711 = dma.vmem_to_hbm [thread:$0]  (%p1366_p9), %s518_s7, 128, %s1345_s6, [#allocation12]  }
 0x2fc   : > { %s493_s26 = scalar_lea.sflag [#allocation4], %s1239_s30  ;;  %s930_s7 = scalar_lea.vmem %s1293_s19, 128 }
 0x2fd   : > { %p931_p3 = scmp.ne.s32.totalorder %s1293_s19, %s930_s7  ;;  %s1020_s17 = smov [#allocation10]  }
 0x2fe   : > { %s934_s8 = sshll.u32 %s1020_s17, 4  ;;  %s935_s8 = int_to_ptr.vmem [resolvable:$false] %s934_s8 }
 0x2ff   : > { %p932_p7 = pnand %p931_p3, %p1194_p6  ;;  %s936_s10 = scalar_lea.vmem %s935_s8, 256 }
 0x300   : > { %p937_p13 = scmp.lt.s32.totalorder %s1293_s19, %s935_s8  ;;  %p938_p5 = scmp.lt.s32.totalorder %s936_s10, %s930_s7 }
 0x301   : > { %p933_p10 = pneg %p932_p7 }
 0x302   : > { %p939_p0 = por %p938_p5, %p937_p13 }
 0x304   : > { %p940_p11 = pnand %p939_p0, %p933_p10 }
 0x37a   : > { %v486_v29 = vpop.xlane.xlu0 %485 }
 0x37b   : > { %788 = vlog2.f32 %v486_v29 }
 0x385   : > { %v789_v30 = vpop.eup %788 }
 0x386   : > { %v488_v31 = vmul.f32 0.6931472, %v789_v30 }
 0x388   : > { %v489_v32 = vsub.f32 %v482_v26, %v488_v31 }
 0x38a   : > { %490 = vst [vmem:[%s1257_s29] sm:$0xff] %v489_v32 }
 0x38b   : > { %943 = shalt.err (!%p940_p11)
}
 0x38c   : > { %s944_s30 = scalar_lea.hbm %s1291_s14, 128  ;;  %s948_s12 = scalar_lea.hbm %s1344_s5, 1024 }
 0x38d   : > { %p945_p8 = scmp.ne.s32.totalorder %s1291_s14, %s944_s30  ;;  %p949_p1 = scmp.lt.u32.totalorder %s1291_s14, %s1344_s5 }
 0x38e   : > { %p950_p4 = scmp.lt.u32.totalorder %s948_s12, %s944_s30  ;;  %p952_p3 = scmp.lt.u32.totalorder %s944_s30, %s1291_s14 }
 0x38f   : > { %p946_p12 = pnand %p945_p8, %p1194_p6 }
 0x390   : > { %p951_p9 = por %p950_p4, %p949_p1 }
 0x391   : > { %p947_p2 = pneg %p946_p12 }
 0x392   : > { %p953_p7 = por %p952_p3, %p951_p9 }
 0x394   : > { %p954_p10 = pnand %p953_p7, %p947_p2 }
 0x396   : > { %957 = shalt.err (!%p954_p10)
}
 0x397   : > { %709 = dma.vmem_to_hbm [thread:$0]  (%p1194_p6), %s1293_s19, 128, %s1291_s14, %s493_s26  }
 0x398   : > { %p1367_p13 = scmp.eq.s32.totalorder %s1077_s25, 7 }
 0x39a   : > { %987 = dma.done.wait (%p1367_p13), [#allocation12], 128   ;;  %p1368_p5 = pmov %p1367_p13 }
 0x39c   : > { %989 = vsyncadd (%p1368_p5), [#allocation12], 4294967168 }
 0x39d PF: > { %p742_p0 = scmp.ge.s32.totalorder %s1008_s24, 2  ;;  %s533_s9 = sand.u32 1, %s996_s21  }
 0x39e   : > { %p1369_p11 = scmp.ne.s32.totalorder %s1350_s28, 0  ;;  %s534_s20 = scalar_lea.sflag [#allocation4], %s533_s9 }
 0x3a0   : > { %p730_p8 = pnand %p742_p0, %p1369_p11 }
 0x3a2   : > { %991 = dma.done.wait (!%p730_p8), %s534_s20, 128  }
 0x3a3   : > { %993 = vsyncadd (!%p730_p8), %s534_s20, 4294967168  ;;  %p23_p6 = scmp.ge.s32.totalorder %s1180_s18, 10   ;;  %s1370_s21 = smov %s1000_s22 }
 0x3a4   : > { %s1371_s22 = smov %s1004_s23  ;;  %s1372_s23 = smov %s1190_s11 }
 0x3a5   : > { %s1373_s24 = smov %s1180_s18  ;;  %25 = sbr.rel (!%p23_p6) target bundleno = 8 (0x8), region = 109 }
 0x3ac   :  { %539 = vsyncpa [#allocation3], 1 }
 0x3ad   :  { %541 = vsyncpa [#allocation3 + $0x1], 1 }
 0x3ae   :  { %542 = vsyncpa [#allocation6], 1 }
 0x3af   :  { %543 = vsyncpa [#allocation9], 1 }
 0x3b0   :  { %544 = vsyncpa [#allocation4], 1 }
 0x3b1   :  { %546 = vsyncpa [#allocation4 + $0x1], 1 }
 0x3b2   :  { %547 = vsyncpa [#allocation12], 1 }

</bundles_post_ra>
